<compile_context>
chip_gen: v7x
topology: tpu7x:2x2x1
jax: 0.10.0
libtpu: 0.0.40
codegen_flags: <defaults>
</compile_context>

<pallas_src>
import math

import jax
import jax.numpy as jnp
from jax.experimental import pallas as pl
from jax.experimental.pallas import tpu as pltpu


def _round_up(x: int, m: int) -> int:
    return ((x + m - 1) // m) * m


def _make_gather_kernel(rows_per_block: int, D: int, unroll: int):
    def kernel(idx_ref,    # SMEM scalar prefetch: (n_rows_total,) int32 flat row ids
               ctx_ref,    # HBM (pl.ANY):         (B*S, D)
               mask_ref,   # VMEM:                 (rows_per_block, 1) f32, 1.0 = keep row
               pad_ref,    # VMEM:                 (1, D) learned padding row
               out_ref,    # VMEM output block:    (rows_per_block, D)
               sem):       # DMA semaphore:        (1,)
        row0 = pl.program_id(0) * rows_per_block

        # Issue every row DMA (HBM row -> its slot in the output block) before
        # waiting on any of them; all copies share one semaphore and are the
        # same size, so per-row waits below are completion-order independent.
        def issue(r, carry):
            src = idx_ref[row0 + r]                      # clamped, always in-bounds
            pltpu.make_async_copy(
                ctx_ref.at[pl.ds(src, 1), :],
                out_ref.at[pl.ds(r, 1), :],
                sem.at[0],
            ).start()
            return carry

        jax.lax.fori_loop(0, rows_per_block, issue, 0, unroll=unroll)

        # Drain: one wait per issued row.  The wait only uses the descriptor's
        # size + semaphore, so a constant source slice is fine (no SMEM reads
        # after the first .wait()).
        def drain(r, carry):
            pltpu.make_async_copy(
                ctx_ref.at[pl.ds(0, 1), :],
                out_ref.at[pl.ds(r, 1), :],
                sem.at[0],
            ).wait()
            return carry

        jax.lax.fori_loop(0, rows_per_block, drain, 0, unroll=unroll)

        # Replace invalid slots (mask == 0) with the learned padding row; one
        # cheap block-wide select, negligible next to the DMA gather.
        keep = mask_ref[...] > 0.5                                     # (rows, 1)
        pad_b = jnp.broadcast_to(pad_ref[...], (rows_per_block, D))
        out_ref[...] = jnp.where(keep, out_ref[...], pad_b).astype(out_ref.dtype)

    return kernel


def static_configuration_encoder(contextualized_input_batch, stacks, buffers,
                                 stack_lengths, buffer_lengths, padding,
                                 num_stack: int = 3, num_buffer: int = 1,
                                 batch_block: int = 32):
    ctx = contextualized_input_batch
    B, S, D = ctx.shape
    n_slots = num_stack + num_buffer

    # Batch block: (bb * n_slots) must be a multiple of 8 (sublane tiling).
    # Cap bb so the grid keeps >= 2 steps when B allows it (v7x megacore).
    m = 8 // math.gcd(n_slots, 8)
    bb = max(m, min(batch_block, _round_up(-(-B // 2), m)))
    nB = _round_up(B, bb)
    rows_per_block = bb * n_slots
    n_rows = nB * n_slots

    # Slot token indices + validity; fully-resolved flat row indices into the
    # (B*S, D) context.  Invalid slots point at row 0 (overwritten by padding
    # in-kernel), so every DMA source is in-bounds (Pallas does no ref bounds
    # checks).
    idx_all = jnp.concatenate([stacks, buffers], axis=1).astype(jnp.int32)      # (B, n_slots)
    valid = jnp.concatenate(
        [jnp.arange(num_stack)[None, :] < stack_lengths[:, None],
         jnp.arange(num_buffer)[None, :] < buffer_lengths[:, None]], axis=1)     # (B, n_slots)
    base = (jnp.arange(B, dtype=jnp.int32) * S)[:, None]
    flat_idx = jnp.where(valid, base + jnp.clip(idx_all, 0, S - 1), 0)

    # Pad only the tiny per-slot index/mask arrays up to a whole number of batch
    # blocks; the (B, S, D) context is only reshaped (no copy, no padding).
    pad_b = nB - B
    flat_idx = jnp.pad(flat_idx, ((0, pad_b), (0, 0))).reshape(n_rows).astype(jnp.int32)
    mask = jnp.pad(valid.astype(jnp.float32), ((0, pad_b), (0, 0))).reshape(n_rows, 1)

    ctx_flat = ctx.reshape(B * S, D)                     # view-style reshape, no copy
    pad_row = padding.reshape(1, D).astype(ctx.dtype)

    unroll = max(1, min(8, rows_per_block))

    grid_spec = pltpu.PrefetchScalarGridSpec(
        num_scalar_prefetch=1,
        grid=(nB // bb,),
        in_specs=[
            pl.BlockSpec(memory_space=pl.ANY),                            # ctx stays in HBM
            pl.BlockSpec((rows_per_block, 1), lambda g, idx: (g, 0)),      # validity mask
            pl.BlockSpec((1, D), lambda g, idx: (0, 0)),                   # padding row
        ],
        out_specs=pl.BlockSpec((rows_per_block, D), lambda g, idx: (g, 0)),
        scratch_shapes=[pltpu.SemaphoreType.DMA((1,))],
    )

    out = pl.pallas_call(
        _make_gather_kernel(rows_per_block, D, unroll),
        out_shape=jax.ShapeDtypeStruct((n_rows, D), ctx.dtype),
        grid_spec=grid_spec,
        compiler_params=pltpu.CompilerParams(
            dimension_semantics=("parallel",)),
    )(flat_idx, ctx_flat, mask, pad_row)

    # (B*n_slots, D) rows (batch-major, slot-minor) -> (B, n_slots*D)
    # == torch.cat((stack_batch, buffer_batch), dim=1)
    return out[:B * n_slots].reshape(B, n_slots * D)


def _reference(ctx, stacks, buffers, slen, blen, padding, num_stack, num_buffer):
    """Pure-JAX reference mirroring get_padded_tensors_for_indices + cat."""
    B = ctx.shape[0]

    def padded(indices, lengths, max_len):
        gathered = jax.vmap(lambda seq, idx: seq[idx])(ctx, indices)            # (B, L, D)
        mask = (jnp.arange(max_len)[None, :] < lengths[:, None])[..., None]      # (B, L, 1)
        return jnp.where(mask, gathered, padding[None, None, :]).reshape(B, -1)

    return jnp.concatenate(
        [padded(stacks, slen, num_stack), padded(buffers, blen, num_buffer)],
        axis=1,
    )


if __name__ == "__main__":
    NUM_STACK, NUM_BUFFER = 3, 1

    # --- small test (module-default sizes) ------------------------------------
    B, S, D = 2, 8, 128
    key = jax.random.PRNGKey(0)
    k_ctx, k_pad, k_stk, k_buf = jax.random.split(key, 4)

    ctx = jax.random.normal(k_ctx, (B, S, D), dtype=jnp.float32)
    padding = jax.random.normal(k_pad, (D,), dtype=jnp.float32)
    stacks = jax.random.randint(k_stk, (B, NUM_STACK), 0, S, dtype=jnp.int32)
    buffers = jax.random.randint(k_buf, (B, NUM_BUFFER), 0, S, dtype=jnp.int32)
    stack_lengths = jnp.array([2, 3], dtype=jnp.int32)
    buffer_lengths = jnp.array([1, 0], dtype=jnp.int32)

    out = static_configuration_encoder(ctx, stacks, buffers, stack_lengths,
                                       buffer_lengths, padding,
                                       num_stack=NUM_STACK, num_buffer=NUM_BUFFER)
    out = jax.block_until_ready(out)
    ref = _reference(ctx, stacks, buffers, stack_lengths, buffer_lengths,
                     padding, NUM_STACK, NUM_BUFFER)
    assert out.shape == (B, (NUM_STACK + NUM_BUFFER) * D), out.shape
    assert jnp.allclose(out, ref, atol=1e-6), "mismatch vs. reference (small)"

    # --- second test: grid > 1 AND ragged batch (B not a multiple of bb) -------
    B2, S2, D2 = 13, 24, 128
    key2 = jax.random.PRNGKey(1)
    k_ctx, k_pad, k_stk, k_buf, k_sl, k_bl = jax.random.split(key2, 6)
    ctx2 = jax.random.normal(k_ctx, (B2, S2, D2), dtype=jnp.float32)
    padding2 = jax.random.normal(k_pad, (D2,), dtype=jnp.float32)
    stacks2 = jax.random.randint(k_stk, (B2, NUM_STACK), 0, S2, dtype=jnp.int32)
    buffers2 = jax.random.randint(k_buf, (B2, NUM_BUFFER), 0, S2, dtype=jnp.int32)
    slen2 = jax.random.randint(k_sl, (B2,), 0, NUM_STACK + 1, dtype=jnp.int32)
    blen2 = jax.random.randint(k_bl, (B2,), 0, NUM_BUFFER + 1, dtype=jnp.int32)

    out2 = static_configuration_encoder(ctx2, stacks2, buffers2, slen2, blen2,
                                        padding2, num_stack=NUM_STACK,
                                        num_buffer=NUM_BUFFER)
    out2 = jax.block_until_ready(out2)
    ref2 = _reference(ctx2, stacks2, buffers2, slen2, blen2, padding2,
                      NUM_STACK, NUM_BUFFER)
    assert out2.shape == (B2, (NUM_STACK + NUM_BUFFER) * D2), out2.shape
    assert jnp.allclose(out2, ref2, atol=1e-6), "mismatch vs. reference (blocked/ragged)"

    print("KERNEL_OK")
</pallas_src>

<mosaic_0001>
module attributes {stable_mosaic.version = 11 : i64} {
  func.func @kernel(%arg0: i32, %arg1: memref<8xi32, #tpu.memory_space<smem>>, %arg2: memref<16x128xf32, #tpu.memory_space<any>>, %arg3: memref<8x1xf32, #tpu.memory_space<vmem>>, %arg4: memref<1x128xf32, #tpu.memory_space<vmem>>, %arg5: memref<8x128xf32, #tpu.memory_space<vmem>>, %arg6: memref<1x!tpu.dma_semaphore, #tpu.memory_space<semaphore_mem>>) attributes {dimension_semantics = [#tpu.dimension_semantics<parallel>], iteration_bounds = array<i64: 1>, scalar_prefetch = 1 : i64, scratch_operands = 1 : i64, tpu.core_type = #tpu.core_type<tc>, window_params = [{}, {transform_indices = @transform_1, window_bounds = array<i64: 8, 1>}, {pipeline_mode = #tpu.pipeline_mode<synchronous>, transform_indices = @transform_2, window_bounds = array<i64: 1, 128>}, {transform_indices = @transform_3, window_bounds = array<i64: 8, 128>}]} {
    %c8_i32 = arith.constant 8 : i32
    %0 = arith.muli %arg0, %c8_i32 : i32
    %c0_i32 = arith.constant 0 : i32
    %1 = arith.addi %0, %c0_i32 : i32
    %2 = arith.index_cast %1 : i32 to index
    %3 = memref.load %arg1[%2] : memref<8xi32, #tpu.memory_space<smem>>
    %c0_i32_0 = arith.constant 0 : i32
    %c0_i32_1 = arith.constant 0 : i32
    %4 = tpu.memref_slice %arg2[%3, %c0_i32_1] : memref<16x128xf32, #tpu.memory_space<any>> -> memref<1x128xf32, #tpu.memory_space<any>>
    %c0_i32_2 = arith.constant 0 : i32
    %5 = tpu.memref_slice %arg5[%c0_i32, %c0_i32_2] : memref<8x128xf32, #tpu.memory_space<vmem>> -> memref<1x128xf32, #tpu.memory_space<vmem>>
    %6 = tpu.memref_slice %arg6[%c0_i32_0] : memref<1x!tpu.dma_semaphore, #tpu.memory_space<semaphore_mem>> -> memref<1x!tpu.dma_semaphore, #tpu.memory_space<semaphore_mem>>
    %7 = tpu.memref_squeeze %6 : memref<1x!tpu.dma_semaphore, #tpu.memory_space<semaphore_mem>> -> memref<!tpu.dma_semaphore, #tpu.memory_space<semaphore_mem>>
    tpu.enqueue_dma source(%4 : memref<1x128xf32, #tpu.memory_space<any>>) target(%5 : memref<1x128xf32, #tpu.memory_space<vmem>>) target_semaphore(%7 : memref<!tpu.dma_semaphore, #tpu.memory_space<semaphore_mem>>)
    %c1_i32 = arith.constant 1 : i32
    %8 = arith.addi %0, %c1_i32 : i32
    %9 = arith.index_cast %8 : i32 to index
    %10 = memref.load %arg1[%9] : memref<8xi32, #tpu.memory_space<smem>>
    %c0_i32_3 = arith.constant 0 : i32
    %c0_i32_4 = arith.constant 0 : i32
    %11 = tpu.memref_slice %arg2[%10, %c0_i32_4] : memref<16x128xf32, #tpu.memory_space<any>> -> memref<1x128xf32, #tpu.memory_space<any>>
    %c0_i32_5 = arith.constant 0 : i32
    %12 = tpu.memref_slice %arg5[%c1_i32, %c0_i32_5] : memref<8x128xf32, #tpu.memory_space<vmem>> -> memref<1x128xf32, #tpu.memory_space<vmem>>
    %13 = tpu.memref_slice %arg6[%c0_i32_3] : memref<1x!tpu.dma_semaphore, #tpu.memory_space<semaphore_mem>> -> memref<1x!tpu.dma_semaphore, #tpu.memory_space<semaphore_mem>>
    %14 = tpu.memref_squeeze %13 : memref<1x!tpu.dma_semaphore, #tpu.memory_space<semaphore_mem>> -> memref<!tpu.dma_semaphore, #tpu.memory_space<semaphore_mem>>
    tpu.enqueue_dma source(%11 : memref<1x128xf32, #tpu.memory_space<any>>) target(%12 : memref<1x128xf32, #tpu.memory_space<vmem>>) target_semaphore(%14 : memref<!tpu.dma_semaphore, #tpu.memory_space<semaphore_mem>>)
    %c2_i32 = arith.constant 2 : i32
    %15 = arith.addi %0, %c2_i32 : i32
    %16 = arith.index_cast %15 : i32 to index
    %17 = memref.load %arg1[%16] : memref<8xi32, #tpu.memory_space<smem>>
    %c0_i32_6 = arith.constant 0 : i32
    %c0_i32_7 = arith.constant 0 : i32
    %18 = tpu.memref_slice %arg2[%17, %c0_i32_7] : memref<16x128xf32, #tpu.memory_space<any>> -> memref<1x128xf32, #tpu.memory_space<any>>
    %c0_i32_8 = arith.constant 0 : i32
    %19 = tpu.memref_slice %arg5[%c2_i32, %c0_i32_8] : memref<8x128xf32, #tpu.memory_space<vmem>> -> memref<1x128xf32, #tpu.memory_space<vmem>>
    %20 = tpu.memref_slice %arg6[%c0_i32_6] : memref<1x!tpu.dma_semaphore, #tpu.memory_space<semaphore_mem>> -> memref<1x!tpu.dma_semaphore, #tpu.memory_space<semaphore_mem>>
    %21 = tpu.memref_squeeze %20 : memref<1x!tpu.dma_semaphore, #tpu.memory_space<semaphore_mem>> -> memref<!tpu.dma_semaphore, #tpu.memory_space<semaphore_mem>>
    tpu.enqueue_dma source(%18 : memref<1x128xf32, #tpu.memory_space<any>>) target(%19 : memref<1x128xf32, #tpu.memory_space<vmem>>) target_semaphore(%21 : memref<!tpu.dma_semaphore, #tpu.memory_space<semaphore_mem>>)
    %c3_i32 = arith.constant 3 : i32
    %22 = arith.addi %0, %c3_i32 : i32
    %23 = arith.index_cast %22 : i32 to index
    %24 = memref.load %arg1[%23] : memref<8xi32, #tpu.memory_space<smem>>
    %c0_i32_9 = arith.constant 0 : i32
    %c0_i32_10 = arith.constant 0 : i32
    %25 = tpu.memref_slice %arg2[%24, %c0_i32_10] : memref<16x128xf32, #tpu.memory_space<any>> -> memref<1x128xf32, #tpu.memory_space<any>>
    %c0_i32_11 = arith.constant 0 : i32
    %26 = tpu.memref_slice %arg5[%c3_i32, %c0_i32_11] : memref<8x128xf32, #tpu.memory_space<vmem>> -> memref<1x128xf32, #tpu.memory_space<vmem>>
    %27 = tpu.memref_slice %arg6[%c0_i32_9] : memref<1x!tpu.dma_semaphore, #tpu.memory_space<semaphore_mem>> -> memref<1x!tpu.dma_semaphore, #tpu.memory_space<semaphore_mem>>
    %28 = tpu.memref_squeeze %27 : memref<1x!tpu.dma_semaphore, #tpu.memory_space<semaphore_mem>> -> memref<!tpu.dma_semaphore, #tpu.memory_space<semaphore_mem>>
    tpu.enqueue_dma source(%25 : memref<1x128xf32, #tpu.memory_space<any>>) target(%26 : memref<1x128xf32, #tpu.memory_space<vmem>>) target_semaphore(%28 : memref<!tpu.dma_semaphore, #tpu.memory_space<semaphore_mem>>)
    %c4_i32 = arith.constant 4 : i32
    %29 = arith.addi %0, %c4_i32 : i32
    %30 = arith.index_cast %29 : i32 to index
    %31 = memref.load %arg1[%30] : memref<8xi32, #tpu.memory_space<smem>>
    %c0_i32_12 = arith.constant 0 : i32
    %c0_i32_13 = arith.constant 0 : i32
    %32 = tpu.memref_slice %arg2[%31, %c0_i32_13] : memref<16x128xf32, #tpu.memory_space<any>> -> memref<1x128xf32, #tpu.memory_space<any>>
    %c0_i32_14 = arith.constant 0 : i32
    %33 = tpu.memref_slice %arg5[%c4_i32, %c0_i32_14] : memref<8x128xf32, #tpu.memory_space<vmem>> -> memref<1x128xf32, #tpu.memory_space<vmem>>
    %34 = tpu.memref_slice %arg6[%c0_i32_12] : memref<1x!tpu.dma_semaphore, #tpu.memory_space<semaphore_mem>> -> memref<1x!tpu.dma_semaphore, #tpu.memory_space<semaphore_mem>>
    %35 = tpu.memref_squeeze %34 : memref<1x!tpu.dma_semaphore, #tpu.memory_space<semaphore_mem>> -> memref<!tpu.dma_semaphore, #tpu.memory_space<semaphore_mem>>
    tpu.enqueue_dma source(%32 : memref<1x128xf32, #tpu.memory_space<any>>) target(%33 : memref<1x128xf32, #tpu.memory_space<vmem>>) target_semaphore(%35 : memref<!tpu.dma_semaphore, #tpu.memory_space<semaphore_mem>>)
    %c5_i32 = arith.constant 5 : i32
    %36 = arith.addi %0, %c5_i32 : i32
    %37 = arith.index_cast %36 : i32 to index
    %38 = memref.load %arg1[%37] : memref<8xi32, #tpu.memory_space<smem>>
    %c0_i32_15 = arith.constant 0 : i32
    %c0_i32_16 = arith.constant 0 : i32
    %39 = tpu.memref_slice %arg2[%38, %c0_i32_16] : memref<16x128xf32, #tpu.memory_space<any>> -> memref<1x128xf32, #tpu.memory_space<any>>
    %c0_i32_17 = arith.constant 0 : i32
    %40 = tpu.memref_slice %arg5[%c5_i32, %c0_i32_17] : memref<8x128xf32, #tpu.memory_space<vmem>> -> memref<1x128xf32, #tpu.memory_space<vmem>>
    %41 = tpu.memref_slice %arg6[%c0_i32_15] : memref<1x!tpu.dma_semaphore, #tpu.memory_space<semaphore_mem>> -> memref<1x!tpu.dma_semaphore, #tpu.memory_space<semaphore_mem>>
    %42 = tpu.memref_squeeze %41 : memref<1x!tpu.dma_semaphore, #tpu.memory_space<semaphore_mem>> -> memref<!tpu.dma_semaphore, #tpu.memory_space<semaphore_mem>>
    tpu.enqueue_dma source(%39 : memref<1x128xf32, #tpu.memory_space<any>>) target(%40 : memref<1x128xf32, #tpu.memory_space<vmem>>) target_semaphore(%42 : memref<!tpu.dma_semaphore, #tpu.memory_space<semaphore_mem>>)
    %c6_i32 = arith.constant 6 : i32
    %43 = arith.addi %0, %c6_i32 : i32
    %44 = arith.index_cast %43 : i32 to index
    %45 = memref.load %arg1[%44] : memref<8xi32, #tpu.memory_space<smem>>
    %c0_i32_18 = arith.constant 0 : i32
    %c0_i32_19 = arith.constant 0 : i32
    %46 = tpu.memref_slice %arg2[%45, %c0_i32_19] : memref<16x128xf32, #tpu.memory_space<any>> -> memref<1x128xf32, #tpu.memory_space<any>>
    %c0_i32_20 = arith.constant 0 : i32
    %47 = tpu.memref_slice %arg5[%c6_i32, %c0_i32_20] : memref<8x128xf32, #tpu.memory_space<vmem>> -> memref<1x128xf32, #tpu.memory_space<vmem>>
    %48 = tpu.memref_slice %arg6[%c0_i32_18] : memref<1x!tpu.dma_semaphore, #tpu.memory_space<semaphore_mem>> -> memref<1x!tpu.dma_semaphore, #tpu.memory_space<semaphore_mem>>
    %49 = tpu.memref_squeeze %48 : memref<1x!tpu.dma_semaphore, #tpu.memory_space<semaphore_mem>> -> memref<!tpu.dma_semaphore, #tpu.memory_space<semaphore_mem>>
    tpu.enqueue_dma source(%46 : memref<1x128xf32, #tpu.memory_space<any>>) target(%47 : memref<1x128xf32, #tpu.memory_space<vmem>>) target_semaphore(%49 : memref<!tpu.dma_semaphore, #tpu.memory_space<semaphore_mem>>)
    %c7_i32 = arith.constant 7 : i32
    %50 = arith.addi %0, %c7_i32 : i32
    %51 = arith.index_cast %50 : i32 to index
    %52 = memref.load %arg1[%51] : memref<8xi32, #tpu.memory_space<smem>>
    %c0_i32_21 = arith.constant 0 : i32
    %c0_i32_22 = arith.constant 0 : i32
    %53 = tpu.memref_slice %arg2[%52, %c0_i32_22] : memref<16x128xf32, #tpu.memory_space<any>> -> memref<1x128xf32, #tpu.memory_space<any>>
    %c0_i32_23 = arith.constant 0 : i32
    %54 = tpu.memref_slice %arg5[%c7_i32, %c0_i32_23] : memref<8x128xf32, #tpu.memory_space<vmem>> -> memref<1x128xf32, #tpu.memory_space<vmem>>
    %55 = tpu.memref_slice %arg6[%c0_i32_21] : memref<1x!tpu.dma_semaphore, #tpu.memory_space<semaphore_mem>> -> memref<1x!tpu.dma_semaphore, #tpu.memory_space<semaphore_mem>>
    %56 = tpu.memref_squeeze %55 : memref<1x!tpu.dma_semaphore, #tpu.memory_space<semaphore_mem>> -> memref<!tpu.dma_semaphore, #tpu.memory_space<semaphore_mem>>
    tpu.enqueue_dma source(%53 : memref<1x128xf32, #tpu.memory_space<any>>) target(%54 : memref<1x128xf32, #tpu.memory_space<vmem>>) target_semaphore(%56 : memref<!tpu.dma_semaphore, #tpu.memory_space<semaphore_mem>>)
    %c8_i32_24 = arith.constant 8 : i32
    %c0_i32_25 = arith.constant 0 : i32
    %c0_i32_26 = arith.constant 0 : i32
    %c0_i32_27 = arith.constant 0 : i32
    %c0_i32_28 = arith.constant 0 : i32
    %57 = tpu.memref_slice %arg2[%c0_i32_27, %c0_i32_28] : memref<16x128xf32, #tpu.memory_space<any>> -> memref<1x128xf32, #tpu.memory_space<any>>
    %c0_i32_29 = arith.constant 0 : i32
    %58 = tpu.memref_slice %arg5[%c0_i32_25, %c0_i32_29] : memref<8x128xf32, #tpu.memory_space<vmem>> -> memref<1x128xf32, #tpu.memory_space<vmem>>
    %59 = tpu.memref_slice %arg6[%c0_i32_26] : memref<1x!tpu.dma_semaphore, #tpu.memory_space<semaphore_mem>> -> memref<1x!tpu.dma_semaphore, #tpu.memory_space<semaphore_mem>>
    %60 = tpu.memref_squeeze %59 : memref<1x!tpu.dma_semaphore, #tpu.memory_space<semaphore_mem>> -> memref<!tpu.dma_semaphore, #tpu.memory_space<semaphore_mem>>
    tpu.wait_dma2 semaphore(%60 : memref<!tpu.dma_semaphore, #tpu.memory_space<semaphore_mem>>) src(%57 : memref<1x128xf32, #tpu.memory_space<any>>) dst(%58 : memref<1x128xf32, #tpu.memory_space<vmem>>)
    %c1_i32_30 = arith.constant 1 : i32
    %c0_i32_31 = arith.constant 0 : i32
    %c0_i32_32 = arith.constant 0 : i32
    %c0_i32_33 = arith.constant 0 : i32
    %61 = tpu.memref_slice %arg2[%c0_i32_32, %c0_i32_33] : memref<16x128xf32, #tpu.memory_space<any>> -> memref<1x128xf32, #tpu.memory_space<any>>
    %c0_i32_34 = arith.constant 0 : i32
    %62 = tpu.memref_slice %arg5[%c1_i32_30, %c0_i32_34] : memref<8x128xf32, #tpu.memory_space<vmem>> -> memref<1x128xf32, #tpu.memory_space<vmem>>
    %63 = tpu.memref_slice %arg6[%c0_i32_31] : memref<1x!tpu.dma_semaphore, #tpu.memory_space<semaphore_mem>> -> memref<1x!tpu.dma_semaphore, #tpu.memory_space<semaphore_mem>>
    %64 = tpu.memref_squeeze %63 : memref<1x!tpu.dma_semaphore, #tpu.memory_space<semaphore_mem>> -> memref<!tpu.dma_semaphore, #tpu.memory_space<semaphore_mem>>
    tpu.wait_dma2 semaphore(%64 : memref<!tpu.dma_semaphore, #tpu.memory_space<semaphore_mem>>) src(%61 : memref<1x128xf32, #tpu.memory_space<any>>) dst(%62 : memref<1x128xf32, #tpu.memory_space<vmem>>)
    %c2_i32_35 = arith.constant 2 : i32
    %c0_i32_36 = arith.constant 0 : i32
    %c0_i32_37 = arith.constant 0 : i32
    %c0_i32_38 = arith.constant 0 : i32
    %65 = tpu.memref_slice %arg2[%c0_i32_37, %c0_i32_38] : memref<16x128xf32, #tpu.memory_space<any>> -> memref<1x128xf32, #tpu.memory_space<any>>
    %c0_i32_39 = arith.constant 0 : i32
    %66 = tpu.memref_slice %arg5[%c2_i32_35, %c0_i32_39] : memref<8x128xf32, #tpu.memory_space<vmem>> -> memref<1x128xf32, #tpu.memory_space<vmem>>
    %67 = tpu.memref_slice %arg6[%c0_i32_36] : memref<1x!tpu.dma_semaphore, #tpu.memory_space<semaphore_mem>> -> memref<1x!tpu.dma_semaphore, #tpu.memory_space<semaphore_mem>>
    %68 = tpu.memref_squeeze %67 : memref<1x!tpu.dma_semaphore, #tpu.memory_space<semaphore_mem>> -> memref<!tpu.dma_semaphore, #tpu.memory_space<semaphore_mem>>
    tpu.wait_dma2 semaphore(%68 : memref<!tpu.dma_semaphore, #tpu.memory_space<semaphore_mem>>) src(%65 : memref<1x128xf32, #tpu.memory_space<any>>) dst(%66 : memref<1x128xf32, #tpu.memory_space<vmem>>)
    %c3_i32_40 = arith.constant 3 : i32
    %c0_i32_41 = arith.constant 0 : i32
    %c0_i32_42 = arith.constant 0 : i32
    %c0_i32_43 = arith.constant 0 : i32
    %69 = tpu.memref_slice %arg2[%c0_i32_42, %c0_i32_43] : memref<16x128xf32, #tpu.memory_space<any>> -> memref<1x128xf32, #tpu.memory_space<any>>
    %c0_i32_44 = arith.constant 0 : i32
    %70 = tpu.memref_slice %arg5[%c3_i32_40, %c0_i32_44] : memref<8x128xf32, #tpu.memory_space<vmem>> -> memref<1x128xf32, #tpu.memory_space<vmem>>
    %71 = tpu.memref_slice %arg6[%c0_i32_41] : memref<1x!tpu.dma_semaphore, #tpu.memory_space<semaphore_mem>> -> memref<1x!tpu.dma_semaphore, #tpu.memory_space<semaphore_mem>>
    %72 = tpu.memref_squeeze %71 : memref<1x!tpu.dma_semaphore, #tpu.memory_space<semaphore_mem>> -> memref<!tpu.dma_semaphore, #tpu.memory_space<semaphore_mem>>
    tpu.wait_dma2 semaphore(%72 : memref<!tpu.dma_semaphore, #tpu.memory_space<semaphore_mem>>) src(%69 : memref<1x128xf32, #tpu.memory_space<any>>) dst(%70 : memref<1x128xf32, #tpu.memory_space<vmem>>)
    %c4_i32_45 = arith.constant 4 : i32
    %c0_i32_46 = arith.constant 0 : i32
    %c0_i32_47 = arith.constant 0 : i32
    %c0_i32_48 = arith.constant 0 : i32
    %73 = tpu.memref_slice %arg2[%c0_i32_47, %c0_i32_48] : memref<16x128xf32, #tpu.memory_space<any>> -> memref<1x128xf32, #tpu.memory_space<any>>
    %c0_i32_49 = arith.constant 0 : i32
    %74 = tpu.memref_slice %arg5[%c4_i32_45, %c0_i32_49] : memref<8x128xf32, #tpu.memory_space<vmem>> -> memref<1x128xf32, #tpu.memory_space<vmem>>
    %75 = tpu.memref_slice %arg6[%c0_i32_46] : memref<1x!tpu.dma_semaphore, #tpu.memory_space<semaphore_mem>> -> memref<1x!tpu.dma_semaphore, #tpu.memory_space<semaphore_mem>>
    %76 = tpu.memref_squeeze %75 : memref<1x!tpu.dma_semaphore, #tpu.memory_space<semaphore_mem>> -> memref<!tpu.dma_semaphore, #tpu.memory_space<semaphore_mem>>
    tpu.wait_dma2 semaphore(%76 : memref<!tpu.dma_semaphore, #tpu.memory_space<semaphore_mem>>) src(%73 : memref<1x128xf32, #tpu.memory_space<any>>) dst(%74 : memref<1x128xf32, #tpu.memory_space<vmem>>)
    %c5_i32_50 = arith.constant 5 : i32
    %c0_i32_51 = arith.constant 0 : i32
    %c0_i32_52 = arith.constant 0 : i32
    %c0_i32_53 = arith.constant 0 : i32
    %77 = tpu.memref_slice %arg2[%c0_i32_52, %c0_i32_53] : memref<16x128xf32, #tpu.memory_space<any>> -> memref<1x128xf32, #tpu.memory_space<any>>
    %c0_i32_54 = arith.constant 0 : i32
    %78 = tpu.memref_slice %arg5[%c5_i32_50, %c0_i32_54] : memref<8x128xf32, #tpu.memory_space<vmem>> -> memref<1x128xf32, #tpu.memory_space<vmem>>
    %79 = tpu.memref_slice %arg6[%c0_i32_51] : memref<1x!tpu.dma_semaphore, #tpu.memory_space<semaphore_mem>> -> memref<1x!tpu.dma_semaphore, #tpu.memory_space<semaphore_mem>>
    %80 = tpu.memref_squeeze %79 : memref<1x!tpu.dma_semaphore, #tpu.memory_space<semaphore_mem>> -> memref<!tpu.dma_semaphore, #tpu.memory_space<semaphore_mem>>
    tpu.wait_dma2 semaphore(%80 : memref<!tpu.dma_semaphore, #tpu.memory_space<semaphore_mem>>) src(%77 : memref<1x128xf32, #tpu.memory_space<any>>) dst(%78 : memref<1x128xf32, #tpu.memory_space<vmem>>)
    %c6_i32_55 = arith.constant 6 : i32
    %c0_i32_56 = arith.constant 0 : i32
    %c0_i32_57 = arith.constant 0 : i32
    %c0_i32_58 = arith.constant 0 : i32
    %81 = tpu.memref_slice %arg2[%c0_i32_57, %c0_i32_58] : memref<16x128xf32, #tpu.memory_space<any>> -> memref<1x128xf32, #tpu.memory_space<any>>
    %c0_i32_59 = arith.constant 0 : i32
    %82 = tpu.memref_slice %arg5[%c6_i32_55, %c0_i32_59] : memref<8x128xf32, #tpu.memory_space<vmem>> -> memref<1x128xf32, #tpu.memory_space<vmem>>
    %83 = tpu.memref_slice %arg6[%c0_i32_56] : memref<1x!tpu.dma_semaphore, #tpu.memory_space<semaphore_mem>> -> memref<1x!tpu.dma_semaphore, #tpu.memory_space<semaphore_mem>>
    %84 = tpu.memref_squeeze %83 : memref<1x!tpu.dma_semaphore, #tpu.memory_space<semaphore_mem>> -> memref<!tpu.dma_semaphore, #tpu.memory_space<semaphore_mem>>
    tpu.wait_dma2 semaphore(%84 : memref<!tpu.dma_semaphore, #tpu.memory_space<semaphore_mem>>) src(%81 : memref<1x128xf32, #tpu.memory_space<any>>) dst(%82 : memref<1x128xf32, #tpu.memory_space<vmem>>)
    %c7_i32_60 = arith.constant 7 : i32
    %c0_i32_61 = arith.constant 0 : i32
    %c0_i32_62 = arith.constant 0 : i32
    %c0_i32_63 = arith.constant 0 : i32
    %85 = tpu.memref_slice %arg2[%c0_i32_62, %c0_i32_63] : memref<16x128xf32, #tpu.memory_space<any>> -> memref<1x128xf32, #tpu.memory_space<any>>
    %c0_i32_64 = arith.constant 0 : i32
    %86 = tpu.memref_slice %arg5[%c7_i32_60, %c0_i32_64] : memref<8x128xf32, #tpu.memory_space<vmem>> -> memref<1x128xf32, #tpu.memory_space<vmem>>
    %87 = tpu.memref_slice %arg6[%c0_i32_61] : memref<1x!tpu.dma_semaphore, #tpu.memory_space<semaphore_mem>> -> memref<1x!tpu.dma_semaphore, #tpu.memory_space<semaphore_mem>>
    %88 = tpu.memref_squeeze %87 : memref<1x!tpu.dma_semaphore, #tpu.memory_space<semaphore_mem>> -> memref<!tpu.dma_semaphore, #tpu.memory_space<semaphore_mem>>
    tpu.wait_dma2 semaphore(%88 : memref<!tpu.dma_semaphore, #tpu.memory_space<semaphore_mem>>) src(%85 : memref<1x128xf32, #tpu.memory_space<any>>) dst(%86 : memref<1x128xf32, #tpu.memory_space<vmem>>)
    %c8_i32_65 = arith.constant 8 : i32
    %c0 = arith.constant 0 : index
    %c0_66 = arith.constant 0 : index
    %89 = vector.load %arg3[%c0, %c0_66] : memref<8x1xf32, #tpu.memory_space<vmem>>, vector<8x1xf32>
    %cst = arith.constant 5.000000e-01 : f32
    %90 = vector.broadcast %cst : f32 to vector<8x1xf32>
    %91 = arith.cmpf ogt, %89, %90 : vector<8x1xf32>
    %c0_67 = arith.constant 0 : index
    %c0_68 = arith.constant 0 : index
    %92 = vector.load %arg4[%c0_67, %c0_68] : memref<1x128xf32, #tpu.memory_space<vmem>>, vector<1x128xf32>
    %93 = vector.shape_cast %92 : vector<1x128xf32> to vector<1x128xf32>
    %94 = vector.broadcast %93 : vector<1x128xf32> to vector<8x128xf32>
    %c0_69 = arith.constant 0 : index
    %c0_70 = arith.constant 0 : index
    %95 = vector.load %arg5[%c0_69, %c0_70] : memref<8x128xf32, #tpu.memory_space<vmem>>, vector<8x128xf32>
    %96 = vector.shape_cast %91 : vector<8x1xi1> to vector<8x1xi1>
    %97 = vector.broadcast %96 : vector<8x1xi1> to vector<8x128xi1>
    %98 = arith.select %97, %95, %94 : vector<8x128xi1>, vector<8x128xf32>
    %c0_71 = arith.constant 0 : index
    %c0_72 = arith.constant 0 : index
    %99 = vector.load %arg5[%c0_71, %c0_72] : memref<8x128xf32, #tpu.memory_space<vmem>>, vector<8x128xf32>
    tpu.vector_store %arg5[%c0_71, %c0_72], %98 {strides = array<i32>} : memref<8x128xf32, #tpu.memory_space<vmem>>, vector<8x128xf32>,
    return
  }
  func.func @transform_1(%arg0: i32, %arg1: memref<8xi32, #tpu.memory_space<smem>>) -> (i32, i32) {
    %c0_i32 = arith.constant 0 : i32
    %c0_i32_0 = arith.constant 0 : i32
    return %arg0, %c0_i32 : i32, i32
  }
  func.func @transform_2(%arg0: i32, %arg1: memref<8xi32, #tpu.memory_space<smem>>) -> (i32, i32) {
    %c0_i32 = arith.constant 0 : i32
    %c0_i32_0 = arith.constant 0 : i32
    %c0_i32_1 = arith.constant 0 : i32
    return %c0_i32, %c0_i32_0 : i32, i32
  }
  func.func @transform_3(%arg0: i32, %arg1: memref<8xi32, #tpu.memory_space<smem>>) -> (i32, i32) {
    %c0_i32 = arith.constant 0 : i32
    %c0_i32_0 = arith.constant 0 : i32
    return %arg0, %c0_i32 : i32, i32
  }
}

</mosaic_0001>

<bundles_post_ra>
// kernel: tpu_custom_call.1
= control target key start
LH: loop header
LB: loop body
LE: loop exit
PB: predicated region body
PF: predicated region fallthrough
CT: control target
= control target key end

     0   :  { %s672_s0 = inlined_call_operand.vmem [shape: s32[8], index: 0, kind: input, shape index: {}]   ;;  %s673_s1 = inlined_call_operand.hbm [shape: f32[16,128], index: 1, kind: input, shape index: {}]   ;;  %s674_s2 = inlined_call_operand.vmem [shape: f32[8,1], index: 2, kind: input, shape index: {}]   ;;  %s675_s3 = inlined_call_operand.vmem [shape: f32[1,128], index: 3, kind: input, shape index: {}]   ;;  %s676_s4 = inlined_call_operand.hbm [shape: f32[8,128], index: 4, kind: output, shape index: {}]  }
   0x1   :  { %s9_s17 = sshll.u32 %s672_s0, 4  ;;  %s10_s17 = int_to_ptr.vmem [resolvable:$true] %s9_s17 }
   0x2   :  { %s245_s18 = scalar_lea.vmem %s10_s17, 16  ;;  %p250_p1 = scmp.lt.s32.totalorder %s10_s17, %s10_s17 }
   0x3   :  { %p246_p0 = scmp.ne.s32.totalorder %s10_s17, %s245_s18  ;;  %p251_p2 = scmp.lt.s32.totalorder %s245_s18, %s245_s18 }
   0x5   :  { %p252_p3 = por %p251_p2, %p250_p1 }
   0x7   :  { %p253_p4 = pnand %p252_p3, %p246_p0 }
   0x9   :  { %256 = shalt.err (!%p253_p4)  }
   0xa   :  { %s477_s19 = smov [#allocation4]  }
   0xb   :  { %12 = dma.vmem_to_smem %s10_s17, 16, %s477_s19, [#allocation3] }
   0xc   :  { %471 = dma.done.wait [#allocation3], 16 }
   0xd   :  { %472 = vsyncadd [#allocation3], 4294967280 }
   0xe   :  { %14 = sfence }
   0xf   :  { %15 = vsyncpa [#allocation6], 0  ;;  %s21_s20 = sld [smem:[#allocation4]]  ;;  %s478_s21 = smov [#allocation5]  }
  0x10   :  { %s31_s22 = sshll.u32 %s478_s21, 4  ;;  %s515_s23 = sld [smem:[#allocation4 + $0x1]]  ;;  %s517_s22 = int_to_ptr.vmem [resolvable:$true] %s31_s22 }
  0x11   :  { %s479_s0 = smov [#allocation5 + $0x1]   ;;  %s519_s25 = sld [smem:[#allocation4 + $0x2]] }
  0x12   :  { %s47_s24 = sshll.u32 %s479_s0, 4  ;;  %s480_s26 = smov [#allocation5 + $0x2]   ;;  %s521_s24 = int_to_ptr.vmem [resolvable:$true] %s47_s24 }
  0x13   :  { %s63_s27 = sshll.u32 %s480_s26, 4  ;;  %s523_s28 = sld [smem:[#allocation4 + $0x3]]  ;;  %s525_s27 = int_to_ptr.vmem [resolvable:$true] %s63_s27 }
  0x14   :  { %s534_s11 = scalar_lea.hbm %s673_s1, 256 }
  0x15   :  { %s217_s29 = sshll.u32 %s21_s20, 4 }
  0x16   :  { %s23_s6 = scalar_lea.hbm %s673_s1, %s217_s29  ;;  %s219_s7 = sshll.u32 %s515_s23, 4 }
  0x17   :  { %s257_s8 = scalar_lea.hbm %s23_s6, 16  ;;  %p260_p6 = scmp.lt.u32.totalorder %s23_s6, %s673_s1 }
  0x18   :  { %p258_p5 = scmp.ne.s32.totalorder %s23_s6, %s257_s8  ;;  %p261_p7 = scmp.lt.u32.totalorder %s534_s11, %s257_s8 }
  0x19   :  { %p263_p9 = scmp.lt.u32.totalorder %s257_s8, %s23_s6 }
  0x1a   :  { %p262_p8 = por %p261_p7, %p260_p6 }
  0x1c   :  { %p264_p10 = por %p263_p9, %p262_p8 }
  0x1e   :  { %p265_p11 = pnand %p264_p10, %p258_p5 }
  0x20   :  { %268 = shalt.err (!%p265_p11)  }
  0x21   :  { %s269_s14 = scalar_lea.vmem %s517_s22, 16  ;;  %s543_s15 = scalar_lea.vmem %s517_s22, 128 }
  0x22   :  { %p270_p12 = scmp.ne.s32.totalorder %s517_s22, %s269_s14  ;;  %p274_p13 = scmp.lt.s32.totalorder %s517_s22, %s517_s22 }
  0x23   :  { %p275_p0 = scmp.lt.s32.totalorder %s543_s15, %s269_s14 }
  0x25   :  { %p276_p1 = por %p275_p0, %p274_p13 }
  0x27   :  { %p277_p2 = pnand %p276_p1, %p270_p12 }
  0x29   :  { %280 = shalt.err (!%p277_p2)  }
  0x2a   :  { %34 = dma.hbm_to_vmem [thread:$0]  %s23_s6, 16, %s517_s22, [#allocation2] }
  0x2b   :  { %s38_s18 = scalar_lea.hbm %s673_s1, %s219_s7  ;;  %s221_s19 = sshll.u32 %s519_s25, 4 }
  0x2c   :  { %s281_s20 = scalar_lea.hbm %s38_s18, 16  ;;  %p284_p4 = scmp.lt.u32.totalorder %s38_s18, %s673_s1 }
  0x2d   :  { %p282_p3 = scmp.ne.s32.totalorder %s38_s18, %s281_s20  ;;  %p285_p5 = scmp.lt.u32.totalorder %s534_s11, %s281_s20 }
  0x2e   :  { %p287_p7 = scmp.lt.u32.totalorder %s281_s20, %s38_s18 }
  0x2f   :  { %p286_p6 = por %p285_p5, %p284_p4 }
  0x31   :  { %p288_p8 = por %p287_p7, %p286_p6 }
  0x33   :  { %p289_p9 = pnand %p288_p8, %p282_p3 }
  0x35   :  { %292 = shalt.err (!%p289_p9)  }
  0x36   :  { %s293_s0 = scalar_lea.vmem %s521_s24, 16  ;;  %p298_p11 = scmp.lt.s32.totalorder %s521_s24, %s517_s22 }
  0x37   :  { %p294_p10 = scmp.ne.s32.totalorder %s521_s24, %s293_s0  ;;  %p299_p12 = scmp.lt.s32.totalorder %s543_s15, %s293_s0 }
  0x39   :  { %p300_p0 = por %p299_p12, %p298_p11 }
  0x3b   :  { %p301_p1 = pnand %p300_p0, %p294_p10 }
  0x3d   :  { %304 = shalt.err (!%p301_p1)  }
  0x3e   :  { %50 = dma.hbm_to_vmem [thread:$0]  %s38_s18, 16, %s521_s24, [#allocation2] }
  0x3f   :  { %s54_s29 = scalar_lea.hbm %s673_s1, %s221_s19  ;;  %s223_s30 = sshll.u32 %s523_s28, 4 }
  0x40   :  { %s305_s5 = scalar_lea.hbm %s54_s29, 16  ;;  %p308_p3 = scmp.lt.u32.totalorder %s54_s29, %s673_s1 }
  0x41   :  { %p306_p2 = scmp.ne.s32.totalorder %s54_s29, %s305_s5  ;;  %p309_p4 = scmp.lt.u32.totalorder %s534_s11, %s305_s5 }
  0x42   :  { %p311_p6 = scmp.lt.u32.totalorder %s305_s5, %s54_s29 }
  0x43   :  { %p310_p5 = por %p309_p4, %p308_p3 }
  0x45   :  { %p312_p7 = por %p311_p6, %p310_p5 }
  0x47   :  { %p313_p8 = pnand %p312_p7, %p306_p2 }
  0x49   :  { %316 = shalt.err (!%p313_p8)  }
  0x4a   :  { %s317_s24 = scalar_lea.vmem %s525_s27, 16  ;;  %p322_p10 = scmp.lt.s32.totalorder %s525_s27, %s517_s22 }
  0x4b   :  { %p318_p9 = scmp.ne.s32.totalorder %s525_s27, %s317_s24  ;;  %p323_p11 = scmp.lt.s32.totalorder %s543_s15, %s317_s24 }
  0x4d   :  { %p324_p12 = por %p323_p11, %p322_p10 }
  0x4f   :  { %p325_p0 = pnand %p324_p12, %p318_p9 }
  0x51   :  { %328 = shalt.err (!%p325_p0)  }
  0x52   :  { %66 = dma.hbm_to_vmem [thread:$0]  %s54_s29, 16, %s525_s27, [#allocation2] }
  0x53   :  { %s70_s9 = scalar_lea.hbm %s673_s1, %s223_s30  ;;  %s481_s10 = smov [#allocation5 + $0x3]  }
  0x54   :  { %s79_s12 = sshll.u32 %s481_s10, 4  ;;  %s583_s13 = sld [smem:[#allocation4 + $0x4]]  ;;  %s80_s12 = int_to_ptr.vmem [resolvable:$true] %s79_s12 }
  0x55   :  { %s329_s14 = scalar_lea.hbm %s70_s9, 16  ;;  %p332_p2 = scmp.lt.u32.totalorder %s70_s9, %s673_s1 }
  0x56   :  { %p330_p1 = scmp.ne.s32.totalorder %s70_s9, %s329_s14  ;;  %p333_p3 = scmp.lt.u32.totalorder %s534_s11, %s329_s14 }
  0x57   :  { %p335_p5 = scmp.lt.u32.totalorder %s329_s14, %s70_s9 }
  0x58   :  { %p334_p4 = por %p333_p3, %p332_p2 }
  0x5a   :  { %p336_p6 = por %p335_p5, %p334_p4 }
  0x5c   :  { %p337_p7 = pnand %p336_p6, %p330_p1 }
  0x5e   :  { %340 = shalt.err (!%p337_p7)  }
  0x5f   :  { %s341_s27 = scalar_lea.vmem %s80_s12, 16  ;;  %p346_p9 = scmp.lt.s32.totalorder %s80_s12, %s517_s22 }
  0x60   :  { %p342_p8 = scmp.ne.s32.totalorder %s80_s12, %s341_s27  ;;  %p347_p10 = scmp.lt.s32.totalorder %s543_s15, %s341_s27 }
  0x62   :  { %p348_p11 = por %p347_p10, %p346_p9 }
  0x64   :  { %p349_p12 = pnand %p348_p11, %p342_p8 }
  0x66   :  { %352 = shalt.err (!%p349_p12)  }
  0x67   :  { %82 = dma.hbm_to_vmem [thread:$0]  %s70_s9, 16, %s80_s12, [#allocation2] }
  0x68   :  { %s482_s18 = smov [#allocation5 + $0x4]   ;;  %s591_s20 = sld [smem:[#allocation4 + $0x5]] }
  0x69   :  { %s95_s19 = sshll.u32 %s482_s18, 4  ;;  %s483_s21 = smov [#allocation5 + $0x5]   ;;  %s96_s19 = int_to_ptr.vmem [resolvable:$true] %s95_s19 }
  0x6a   :  { %s111_s23 = sshll.u32 %s483_s21, 4  ;;  %s593_s0 = sld [smem:[#allocation4 + $0x6]]  ;;  %s596_s23 = int_to_ptr.vmem [resolvable:$true] %s111_s23 }
  0x6b   :  { %s225_s25 = sshll.u32 %s583_s13, 4 }
  0x6c   :  { %s86_s30 = scalar_lea.hbm %s673_s1, %s225_s25 }
  0x6d   :  { %s353_s5 = scalar_lea.hbm %s86_s30, 16  ;;  %p356_p1 = scmp.lt.u32.totalorder %s86_s30, %s673_s1 }
  0x6e   :  { %p354_p0 = scmp.ne.s32.totalorder %s86_s30, %s353_s5  ;;  %p357_p2 = scmp.lt.u32.totalorder %s534_s11, %s353_s5 }
  0x6f   :  { %p359_p4 = scmp.lt.u32.totalorder %s353_s5, %s86_s30 }
  0x70   :  { %p358_p3 = por %p357_p2, %p356_p1 }
  0x72   :  { %p360_p5 = por %p359_p4, %p358_p3 }
  0x74   :  { %p361_p6 = pnand %p360_p5, %p354_p0 }
  0x76   :  { %364 = shalt.err (!%p361_p6)  }
  0x77   :  { %s365_s24 = scalar_lea.vmem %s96_s19, 16  ;;  %p370_p8 = scmp.lt.s32.totalorder %s96_s19, %s517_s22 }
  0x78   :  { %p366_p7 = scmp.ne.s32.totalorder %s96_s19, %s365_s24  ;;  %p371_p9 = scmp.lt.s32.totalorder %s543_s15, %s365_s24 }
  0x7a   :  { %p372_p10 = por %p371_p9, %p370_p8 }
  0x7c   :  { %p373_p11 = pnand %p372_p10, %p366_p7 }
  0x7e   :  { %376 = shalt.err (!%p373_p11)  }
  0x7f   :  { %98 = dma.hbm_to_vmem [thread:$0]  %s86_s30, 16, %s96_s19, [#allocation2] }
  0x80   :  { %s227_s28 = sshll.u32 %s591_s20, 4  ;;  %s484_s8 = smov [#allocation5 + $0x6]  }
  0x81   :  { %s127_s9 = sshll.u32 %s484_s8, 4  ;;  %s102_s13 = scalar_lea.hbm %s673_s1, %s227_s28  ;;  %s611_s9 = int_to_ptr.vmem [resolvable:$true] %s127_s9 }
  0x82   :  { %s377_s14 = scalar_lea.hbm %s102_s13, 16  ;;  %p380_p0 = scmp.lt.u32.totalorder %s102_s13, %s673_s1 }
  0x83   :  { %p378_p12 = scmp.ne.s32.totalorder %s102_s13, %s377_s14  ;;  %p381_p1 = scmp.lt.u32.totalorder %s534_s11, %s377_s14 }
  0x84   :  { %p383_p3 = scmp.lt.u32.totalorder %s377_s14, %s102_s13 }
  0x85   :  { %p382_p2 = por %p381_p1, %p380_p0 }
  0x87   :  { %p384_p4 = por %p383_p3, %p382_p2 }
  0x89   :  { %p385_p5 = pnand %p384_p4, %p378_p12 }
  0x8b   :  { %388 = shalt.err (!%p385_p5)  }
  0x8c   :  { %s389_s27 = scalar_lea.vmem %s596_s23, 16  ;;  %p394_p7 = scmp.lt.s32.totalorder %s596_s23, %s517_s22 }
  0x8d   :  { %p390_p6 = scmp.ne.s32.totalorder %s596_s23, %s389_s27  ;;  %p395_p8 = scmp.lt.s32.totalorder %s543_s15, %s389_s27 }
  0x8f   :  { %p396_p9 = por %p395_p8, %p394_p7 }
  0x91   :  { %p397_p10 = pnand %p396_p9, %p390_p6 }
  0x93   :  { %400 = shalt.err (!%p397_p10)  }
  0x94   :  { %114 = dma.hbm_to_vmem [thread:$0]  %s102_s13, 16, %s596_s23, [#allocation2] }
  0x95   :  { %s229_s18 = sshll.u32 %s593_s0, 4  ;;  %s230_s19 = sld [smem:[#allocation4 + $0x7]] }
  0x96   :  { %s118_s25 = scalar_lea.hbm %s673_s1, %s229_s18 }
  0x97   :  { %s401_s26 = scalar_lea.hbm %s118_s25, 16  ;;  %p404_p12 = scmp.lt.u32.totalorder %s118_s25, %s673_s1 }
  0x98   :  { %p402_p11 = scmp.ne.s32.totalorder %s118_s25, %s401_s26  ;;  %p405_p0 = scmp.lt.u32.totalorder %s534_s11, %s401_s26 }
  0x99   :  { %p407_p2 = scmp.lt.u32.totalorder %s401_s26, %s118_s25 }
  0x9a   :  { %p406_p1 = por %p405_p0, %p404_p12 }
  0x9c   :  { %p408_p3 = por %p407_p2, %p406_p1 }
  0x9e   :  { %p409_p4 = pnand %p408_p3, %p402_p11 }
  0xa0   :  { %412 = shalt.err (!%p409_p4)  }
  0xa1   :  { %s413_s23 = scalar_lea.vmem %s611_s9, 16  ;;  %p418_p6 = scmp.lt.s32.totalorder %s611_s9, %s517_s22 }
  0xa2   :  { %p414_p5 = scmp.ne.s32.totalorder %s611_s9, %s413_s23  ;;  %p419_p7 = scmp.lt.s32.totalorder %s543_s15, %s413_s23 }
  0xa4   :  { %p420_p8 = por %p419_p7, %p418_p6 }
  0xa6   :  { %p421_p9 = pnand %p420_p8, %p414_p5 }
  0xa8   :  { %424 = shalt.err (!%p421_p9)  }
  0xa9   :  { %130 = dma.hbm_to_vmem [thread:$0]  %s118_s25, 16, %s611_s9, [#allocation2] }
  0xaa   :  { %s485_s0 = smov [#allocation5 + $0x7]   ;;  %s231_s6 = sshll.u32 %s230_s19, 4 }
  0xab   :  { %s143_s5 = sshll.u32 %s485_s0, 4  ;;  %s134_s28 = scalar_lea.hbm %s673_s1, %s231_s6  ;;  %s144_s5 = int_to_ptr.vmem [resolvable:$true] %s143_s5 }
  0xac   :  { %s425_s8 = scalar_lea.hbm %s134_s28, 16  ;;  %p428_p11 = scmp.lt.u32.totalorder %s134_s28, %s673_s1 }
  0xad   :  { %p426_p10 = scmp.ne.s32.totalorder %s134_s28, %s425_s8  ;;  %p429_p12 = scmp.lt.u32.totalorder %s534_s11, %s425_s8 }
  0xae   :  { %p431_p1 = scmp.lt.u32.totalorder %s425_s8, %s134_s28 }
  0xaf   :  { %p430_p0 = por %p429_p12, %p428_p11 }
  0xb1   :  { %p432_p2 = por %p431_p1, %p430_p0 }
  0xb3   :  { %p433_p3 = pnand %p432_p2, %p426_p10 }
  0xb5   :  { %436 = shalt.err (!%p433_p3)  }
  0xb6   :  { %s437_s9 = scalar_lea.vmem %s144_s5, 16  ;;  %p442_p5 = scmp.lt.s32.totalorder %s144_s5, %s517_s22 }
  0xb7   :  { %p438_p4 = scmp.ne.s32.totalorder %s144_s5, %s437_s9  ;;  %p443_p6 = scmp.lt.s32.totalorder %s543_s15, %s437_s9 }
  0xb9   :  { %p444_p7 = por %p443_p6, %p442_p5 }
  0xbb   :  { %p445_p8 = pnand %p444_p7, %p438_p4 }
  0xbd   :  { %448 = shalt.err (!%p445_p8)  }
  0xbe   :  { %146 = dma.hbm_to_vmem [thread:$0]  %s134_s28, 16, %s144_s5, [#allocation2] }
  0xbf   :  { %473 = dma.done.wait [#allocation2], 128 }
  0xc0   :  { %474 = vsyncadd [#allocation2], 4294967168  ;;  %v486_v0 = vmov 0   ;;  %v164_v1 = vld [vmem:[%s674_s2] sm:$0xff]  ;;  %p450_p9 = scmp.ne.s32.totalorder %s517_s22, %s543_s15  ;;  %p455_p10 = scmp.lt.s32.totalorder %s543_s15, %s543_s15 }
  0xc1   :  { %244 = vset.pattern.permute.xlu0 %v486_v0  ;;  %vm165_vm0 = vcmp.gt.f32.partialorder %v164_v1, 0.5  ;;  %v232_v3 = vld [vmem:[%s675_s3] ss:$0 sm:$0xff] }
  0xc2   :  { %v174_v2 = vsel %vm165_vm0, 1, %v486_v0  ;;  %v173_v4 = vld [vmem:[#allocation5] sm:$0xff]  ;;  %p456_p11 = por %p455_p10, %p274_p13 }
  0xc3   :  { %176 = vperm.xlu0 %244, %v174_v2  }
  0xc4   :  { %p457_p12 = pnand %p456_p11, %p450_p9 }
 0x142   :  { %v177_v5 = vpop.permute.xlu0 %176 }
 0x143   :  { %vm178_vm1 = vcmp.eq.s32.totalorder %v177_v5, 1 }
 0x144   :  { %v179_v6 = vsel %vm178_vm1, %v173_v4, %v232_v3 }
 0x145   :  { %180 = vst [vmem:[#allocation5] sm:$0xff] %v179_v6 }
 0x146   :  { %460 = shalt.err (!%p457_p12)
}
 0x147   :  { %s461_s17 = scalar_lea.hbm %s676_s4, 128 }
 0x148   :  { %p462_p0 = scmp.ne.s32.totalorder %s676_s4, %s461_s17  ;;  %p465_p1 = scmp.lt.u32.totalorder %s461_s17, %s676_s4 }
 0x14a   :  { %p467_p2 = pnand %p465_p1, %p462_p0 }
 0x14c   :  { %470 = shalt.err (!%p467_p2)
}
 0x14d   :  { %190 = dma.vmem_to_hbm [thread:$0]  %s517_s22, 128, %s676_s4, [#allocation6]  }
 0x14e   :  { %475 = dma.done.wait [#allocation6], 128  }
 0x14f   :  { %476 = vsyncadd [#allocation6], 4294967168 }
 0x150   :  { %194 = vsyncpa [#allocation6], 1 }
 0x151   :  { %195 = vsyncmov [#allocation2] }
 0x154   :  { %s196_s21 = vpop.sfrf %195 }
 0x155   :  { %p233_p13 = scmp.ne.s32.totalorder %s196_s21, 0 }
 0x157   :  { %200 = shalt.err (%p233_p13)  }

</bundles_post_ra>
